<compile_context>
chip_gen: v7x
topology: tpu7x:2x2x1
jax: 0.10.0
libtpu: 0.0.40
codegen_flags: <defaults>
</compile_context>

<pallas_src>
import functools

import jax
import jax.numpy as jnp
from jax.experimental import pallas as pl
from jax.experimental.pallas import tpu as pltpu


def _round_up(x, m):
    return -(-x // m) * m


# --------------------------------------------------------------------------
# Kernel
# --------------------------------------------------------------------------
def _dqn_kernel(x_ref, slab_ref, q_ref, act_ref, *, stat, hidden, act):
    """One batch tile.

    x_ref   : [tb, stat]  f32   (natural layout; cast to bf16 in-kernel)
    slab_ref: [R, 128]    bf16  packed {w1|w2|w3|b1|b2|b3}, VMEM-resident
    q_ref   : [act, tb]   f32   Q-values, batch on lanes (unmasked stores)
    act_ref : [1, tb]     int32 argmax action per column (fused get_action)
    """
    S, H, A = stat, hidden, act
    wrows = 2 * H + A

    x = x_ref[...].astype(jnp.bfloat16)                                # [tb, S]

    # Static ref slices of the packed slab (views; tiny loads).
    w1 = slab_ref[0:H, 0:S]                                            # [H, S]
    w2 = slab_ref[H:2 * H, 0:H]                                        # [H, H]
    w3 = slab_ref[2 * H:wrows, 0:H]                                    # [A, H]
    b1 = slab_ref[wrows:wrows + H, 0:1].astype(jnp.float32)            # [H, 1]
    b2 = slab_ref[wrows + H:wrows + 2 * H, 0:1].astype(jnp.float32)    # [H, 1]
    b3 = slab_ref[wrows + 2 * H:wrows + 2 * H + A, 0:1].astype(jnp.float32)

    # Layer 1: contract the feature axis of both operands so the batch lands
    # on the lane axis ([H, tb]) with no host-side transpose of x.
    h = jax.lax.dot_general(w1, x, (((1,), (1,)), ((), ())),
                            preferred_element_type=jnp.float32)        # [H, tb]
    h = jnp.maximum(h + b1, 0.0).astype(jnp.bfloat16)
    # Layer 2: Linear + ReLU
    h = jnp.dot(w2, h, preferred_element_type=jnp.float32)             # [H, tb]
    h = jnp.maximum(h + b2, 0.0).astype(jnp.bfloat16)
    # Layer 3: Linear (no activation)
    q = jnp.dot(w3, h, preferred_element_type=jnp.float32) + b3        # [A, tb]
    q_ref[...] = q.astype(q_ref.dtype)

    # Fused get_action: argmax over the A rows (first-max tie-break, matching
    # torch.argmax).  Unrolled compare/select; VPU slots are idle here anyway.
    best = q[0:1, :]
    best_idx = jnp.zeros(best.shape, jnp.int32)
    for r in range(1, A):
        row = q[r:r + 1, :]
        take = row > best
        best = jnp.where(take, row, best)
        best_idx = jnp.where(take, jnp.int32(r), best_idx)
    act_ref[...] = best_idx


# --------------------------------------------------------------------------
# Wrapper
# --------------------------------------------------------------------------
def _num_tensorcores():
    """Best-effort detection of multi-TensorCore chips (v7x has 2 TCs)."""
    try:
        dev = jax.devices()[0]
        if getattr(dev, "num_cores", 1) > 1:
            return 2
        kind = (getattr(dev, "device_kind", "") or "").lower()
        if "v7" in kind or "7x" in kind:
            return 2
    except Exception:  # pragma: no cover
        pass
    return 1


def _plan_batch(B, tile_b, multi_core):
    """Pick (padded batch, batch tile).

    256-lane alignment feeds the full 256-wide MXU on v6e/v7x (multiple of
    v5e's 128).  Single-TC chips collapse small batches to one grid step; on
    multi-TC chips we keep >=2 steps so both cores get a share.
    """
    b_pad = max(_round_up(B, 256), 256)
    tb = max(256, min(_round_up(tile_b, 256), b_pad))
    if multi_core and b_pad // tb < 2:
        tb = max(128, _round_up(b_pad // 2, 128))
    b_pad = _round_up(b_pad, tb)
    return b_pad, tb


def _dqn_call(x, params, tile_b, multi_core, core_parallel):
    S, H, A = params["dims"]
    slab = params["slab"]
    R = slab.shape[0]
    B = x.shape[0]
    assert x.shape[1] == S

    if multi_core is None:
        multi_core = _num_tensorcores() > 1

    b_pad, tb = _plan_batch(B, tile_b, multi_core)
    xp = x if b_pad == B else jnp.pad(x, ((0, b_pad - B), (0, 0)))
    xp = xp.astype(jnp.float32)      # no-op for f32 input; cast to bf16 happens in-kernel

    kernel = functools.partial(_dqn_kernel, stat=S, hidden=H, act=A)
    grid = (b_pad // tb,)
    flops = 2 * b_pad * (S * H + H * H + H * A)
    bytes_accessed = b_pad * S * 4 + slab.size * 2 + A * b_pad * 4 + b_pad * 4
    cost = pl.CostEstimate(flops=flops, transcendentals=0,
                           bytes_accessed=bytes_accessed)

    in_specs = [
        pl.BlockSpec((tb, S), lambda i: (i, 0)),     # x tile, pipelined over batch
        pl.BlockSpec((R, 128), lambda i: (0, 0)),    # packed weights, VMEM-resident
    ]
    out_specs = (
        pl.BlockSpec((A, tb), lambda i: (0, i)),     # Q^T, batch on lanes
        pl.BlockSpec((1, tb), lambda i: (0, i)),     # fused argmax actions
    )
    out_shape = (
        jax.ShapeDtypeStruct((A, b_pad), jnp.float32),
        jax.ShapeDtypeStruct((1, b_pad), jnp.int32),
    )

    def call(dim_sem):
        return pl.pallas_call(
            kernel,
            out_shape=out_shape,
            grid=grid,
            in_specs=in_specs,
            out_specs=out_specs,
            compiler_params=pltpu.CompilerParams(dimension_semantics=dim_sem),
            cost_estimate=cost,
        )(xp, slab)

    if multi_core and core_parallel:
        # v7x: shard the batch grid across both TensorCores; fall back to the
        # generic semantics if CORE_PARALLEL is rejected by this lowering.
        try:
            q_T, act_row = call((pltpu.CORE_PARALLEL,))
        except Exception:  # pragma: no cover
            q_T, act_row = call(("parallel",))
    else:
        q_T, act_row = call(("parallel",))
    return q_T, act_row, B


def dqn_forward(x, params, *, tile_b=8192, multi_core=None, core_parallel=True):
    """x: [B, stat] f32 -> Q-values [B, act] f32.

    tile_b defaults to 8192 lanes (safe under v5e's 16 MiB scoped-VMEM default;
    can be raised to 32768 for very large batches).  Batches <= tile_b run as a
    single grid step on single-TC chips.
    """
    q_T, _, B = _dqn_call(x, params, tile_b, multi_core, core_parallel)
    return q_T.T[:B]


def dqn_get_action(x, params, *, tile_b=8192, multi_core=None, core_parallel=True):
    """x: [B, stat] f32 -> argmax action [B] int32 (fused in-kernel)."""
    # Q-values are still written to HBM by the shared kernel (A*B*4 bytes,
    # negligible); only the wrapper transpose/slice/argmax HLOs are skipped.
    _, act_row, B = _dqn_call(x, params, tile_b, multi_core, core_parallel)
    return act_row[0, :B]


# --------------------------------------------------------------------------
# Params: pack everything into one lane-padded bf16 slab (single weight DMA)
# --------------------------------------------------------------------------
def pack_dqn_params(w1, b1, w2, b2, w3, b3):
    """Pack PyTorch-layout [out, in] weights + biases into a [R, 128] bf16 slab.

    Rows: [0,H) w1 | [H,2H) w2 | [2H,2H+A) w3 | then b1,b2,b3 as a column-0
    vector in the following rows.  Biases are bf16 in the slab (exact for the
    zero init used by the module).
    """
    H, S = w1.shape
    A = w3.shape[0]
    assert S <= 128 and H <= 128, "slab packing assumes feature dims fit one lane tile"
    wrows = 2 * H + A
    rows = 2 * wrows
    R = _round_up(rows, 8)
    slab = jnp.zeros((R, 128), jnp.float32)
    slab = slab.at[0:H, 0:S].set(w1)
    slab = slab.at[H:2 * H, 0:H].set(w2)
    slab = slab.at[2 * H:wrows, 0:H].set(w3)
    slab = slab.at[wrows:wrows + H, 0].set(b1)
    slab = slab.at[wrows + H:wrows + 2 * H, 0].set(b2)
    slab = slab.at[wrows + 2 * H:rows, 0].set(b3)
    return {"slab": slab.astype(jnp.bfloat16), "dims": (S, H, A)}


def init_dqn_params(key, stat_size, hidden_size, act_size):
    """Matches the module's explicit init:
    kaiming_uniform_(a=1, mode='fan_in', nonlinearity='relu')
      -> gain = sqrt(2), bound = sqrt(3)*gain/sqrt(fan_in) = sqrt(6/fan_in);
    biases = 0.
    """
    def kaiming_uniform(k, fan_out, fan_in):
        bound = jnp.sqrt(6.0 / fan_in)
        return jax.random.uniform(k, (fan_out, fan_in), jnp.float32, -bound, bound)

    k1, k2, k3 = jax.random.split(key, 3)
    w1 = kaiming_uniform(k1, hidden_size, stat_size)
    w2 = kaiming_uniform(k2, hidden_size, hidden_size)
    w3 = kaiming_uniform(k3, act_size, hidden_size)
    zeros = lambda n: jnp.zeros((n,), jnp.float32)
    return pack_dqn_params(w1, zeros(hidden_size), w2, zeros(hidden_size),
                           w3, zeros(act_size))


# --------------------------------------------------------------------------
# Plain-JAX reference (same bf16-in / f32-accumulate math, same packed params)
# --------------------------------------------------------------------------
def dqn_forward_ref(x, params):
    S, H, A = params["dims"]
    slab = params["slab"]
    wrows = 2 * H + A
    w1 = slab[0:H, 0:S]
    w2 = slab[H:2 * H, 0:H]
    w3 = slab[2 * H:wrows, 0:H]
    b1 = slab[wrows:wrows + H, 0].astype(jnp.float32)
    b2 = slab[wrows + H:wrows + 2 * H, 0].astype(jnp.float32)
    b3 = slab[wrows + 2 * H:wrows + 2 * H + A, 0].astype(jnp.float32)

    h = jnp.dot(x.astype(jnp.bfloat16), w1.T, preferred_element_type=jnp.float32)
    h = jnp.maximum(h + b1, 0.0)
    h = jnp.dot(h.astype(jnp.bfloat16), w2.T, preferred_element_type=jnp.float32)
    h = jnp.maximum(h + b2, 0.0)
    q = jnp.dot(h.astype(jnp.bfloat16), w3.T, preferred_element_type=jnp.float32)
    return q + b3


# --------------------------------------------------------------------------
if __name__ == "__main__":
    stat_size, hidden_size, act_size = 16, 32, 8
    key = jax.random.PRNGKey(0)
    kx, kp = jax.random.split(key)
    params = init_dqn_params(kp, stat_size, hidden_size, act_size)

    # (a) Default path: whole (small) batch as one resident tile -> grid=(1,).
    batch = 256
    x = jax.random.normal(kx, (batch, stat_size), jnp.float32)
    q = jax.block_until_ready(dqn_forward(x, params))
    ref = dqn_forward_ref(x, params)
    assert q.shape == (batch, act_size) and q.dtype == jnp.float32
    assert jnp.allclose(q, ref, atol=1e-2, rtol=1e-2)

    # (b) Multi-step pipelined batch grid (tile_b=256 over batch 512 -> grid=(2,)).
    x2 = jax.random.normal(jax.random.PRNGKey(1), (512, stat_size), jnp.float32)
    q2 = jax.block_until_ready(dqn_forward(x2, params, tile_b=256))
    assert jnp.allclose(q2, dqn_forward_ref(x2, params), atol=1e-2, rtol=1e-2)

    # (c) Ragged batch (pad-to-256 path) + fused get_action consistency.
    x_small = x[:10]
    q_small = jax.block_until_ready(dqn_forward(x_small, params))
    acts = jax.block_until_ready(dqn_get_action(x_small, params))
    assert q_small.shape == (10, act_size)
    assert acts.shape == (10,) and acts.dtype == jnp.int32
    assert jnp.allclose(q_small, ref[:10], atol=1e-2, rtol=1e-2)
    assert jnp.array_equal(acts, jnp.argmax(q_small, axis=-1))

    print("KERNEL_OK")
</pallas_src>

<mosaic_0001>
module attributes {stable_mosaic.version = 11 : i64} {
  func.func @_dqn_kernel(%arg0: i32, %arg1: memref<256x16xf32, #tpu.memory_space<vmem>>, %arg2: memref<144x128xbf16, #tpu.memory_space<vmem>>, %arg3: memref<8x256xf32, #tpu.memory_space<vmem>>, %arg4: memref<1x256xi32, #tpu.memory_space<vmem>>) attributes {dimension_semantics = [#tpu.dimension_semantics<parallel>], iteration_bounds = array<i64: 1>, scalar_prefetch = 0 : i64, scratch_operands = 0 : i64, tpu.core_type = #tpu.core_type<tc>, window_params = [{transform_indices = @transform_0, window_bounds = array<i64: 256, 16>}, {pipeline_mode = #tpu.pipeline_mode<synchronous>, transform_indices = @transform_1, window_bounds = array<i64: 144, 128>}, {transform_indices = @transform_2, window_bounds = array<i64: 8, 256>}, {transform_indices = @transform_3, window_bounds = array<i64: 1, 256>}]} {
    %c0 = arith.constant 0 : index
    %c0_0 = arith.constant 0 : index
    %0 = vector.load %arg1[%c0, %c0_0] : memref<256x16xf32, #tpu.memory_space<vmem>>, vector<256x16xf32>
    %1 = arith.truncf %0 : vector<256x16xf32> to vector<256x16xbf16>
    %c0_1 = arith.constant 0 : index
    %c0_2 = arith.constant 0 : index
    %2 = vector.load %arg2[%c0_1, %c0_2] : memref<144x128xbf16, #tpu.memory_space<vmem>>, vector<32x16xbf16>
    %c32 = arith.constant 32 : index
    %c0_3 = arith.constant 0 : index
    %3 = vector.load %arg2[%c32, %c0_3] : memref<144x128xbf16, #tpu.memory_space<vmem>>, vector<32x32xbf16>
    %c64 = arith.constant 64 : index
    %c0_4 = arith.constant 0 : index
    %4 = vector.load %arg2[%c64, %c0_4] : memref<144x128xbf16, #tpu.memory_space<vmem>>, vector<8x32xbf16>
    %c72 = arith.constant 72 : index
    %c0_5 = arith.constant 0 : index
    %5 = vector.load %arg2[%c72, %c0_5] : memref<144x128xbf16, #tpu.memory_space<vmem>>, vector<32x1xbf16>
    %6 = arith.extf %5 : vector<32x1xbf16> to vector<32x1xf32>
    %c104 = arith.constant 104 : index
    %c0_6 = arith.constant 0 : index
    %7 = vector.load %arg2[%c104, %c0_6] : memref<144x128xbf16, #tpu.memory_space<vmem>>, vector<32x1xbf16>
    %8 = arith.extf %7 : vector<32x1xbf16> to vector<32x1xf32>
    %c136 = arith.constant 136 : index
    %c0_7 = arith.constant 0 : index
    %9 = vector.load %arg2[%c136, %c0_7] : memref<144x128xbf16, #tpu.memory_space<vmem>>, vector<8x1xbf16>
    %10 = arith.extf %9 : vector<8x1xbf16> to vector<8x1xf32>
    %cst = arith.constant dense<0.000000e+00> : vector<32x256xf32>
    %11 = tpu.matmul %2, %1, %cst {dimension_numbers = #tpu.dot_dimension_numbers<[1], [1], [0], [0], [0, 0, 1, 0], [], []>} : vector<32x16xbf16>, vector<256x16xbf16>, vector<32x256xf32> -> vector<32x256xf32>
    %12 = vector.broadcast %6 : vector<32x1xf32> to vector<32x256xf32>
    %13 = arith.addf %11, %12 : vector<32x256xf32>
    %cst_8 = arith.constant 0.000000e+00 : f32
    %14 = vector.broadcast %cst_8 : f32 to vector<32x256xf32>
    %15 = arith.maximumf %13, %14 : vector<32x256xf32>
    %16 = arith.truncf %15 : vector<32x256xf32> to vector<32x256xbf16>
    %cst_9 = arith.constant dense<0.000000e+00> : vector<32x256xf32>
    %17 = tpu.matmul %3, %16, %cst_9 {dimension_numbers = #tpu.dot_dimension_numbers<[1], [0], [0], [1], [0, 0, 1, 1], [], []>} : vector<32x32xbf16>, vector<32x256xbf16>, vector<32x256xf32> -> vector<32x256xf32>
    %18 = vector.broadcast %8 : vector<32x1xf32> to vector<32x256xf32>
    %19 = arith.addf %17, %18 : vector<32x256xf32>
    %cst_10 = arith.constant 0.000000e+00 : f32
    %20 = vector.broadcast %cst_10 : f32 to vector<32x256xf32>
    %21 = arith.maximumf %19, %20 : vector<32x256xf32>
    %22 = arith.truncf %21 : vector<32x256xf32> to vector<32x256xbf16>
    %cst_11 = arith.constant dense<0.000000e+00> : vector<8x256xf32>
    %23 = tpu.matmul %4, %22, %cst_11 {dimension_numbers = #tpu.dot_dimension_numbers<[1], [0], [0], [1], [0, 0, 1, 1], [], []>} : vector<8x32xbf16>, vector<32x256xbf16>, vector<8x256xf32> -> vector<8x256xf32>
    %24 = vector.broadcast %10 : vector<8x1xf32> to vector<8x256xf32>
    %25 = arith.addf %23, %24 : vector<8x256xf32>
    %c0_12 = arith.constant 0 : index
    %c0_13 = arith.constant 0 : index
    %26 = vector.load %arg3[%c0_12, %c0_13] : memref<8x256xf32, #tpu.memory_space<vmem>>, vector<8x256xf32>
    tpu.vector_store %arg3[%c0_12, %c0_13], %25 {strides = array<i32>} : memref<8x256xf32, #tpu.memory_space<vmem>>, vector<8x256xf32>,
    %27 = vector.extract_strided_slice %25 {offsets = [0, 0], sizes = [1, 256], strides = [1, 1]} : vector<8x256xf32> to vector<1x256xf32>
    %c0_i32 = arith.constant 0 : i32
    %28 = vector.broadcast %c0_i32 : i32 to vector<1x256xi32>
    %29 = vector.extract_strided_slice %25 {offsets = [1, 0], sizes = [1, 256], strides = [1, 1]} : vector<8x256xf32> to vector<1x256xf32>
    %30 = arith.cmpf ogt, %29, %27 : vector<1x256xf32>
    %31 = arith.select %30, %29, %27 : vector<1x256xi1>, vector<1x256xf32>
    %c1_i32 = arith.constant 1 : i32
    %32 = vector.broadcast %c1_i32 : i32 to vector<1x256xi32>
    %33 = arith.select %30, %32, %28 : vector<1x256xi1>, vector<1x256xi32>
    %34 = vector.extract_strided_slice %25 {offsets = [2, 0], sizes = [1, 256], strides = [1, 1]} : vector<8x256xf32> to vector<1x256xf32>
    %35 = arith.cmpf ogt, %34, %31 : vector<1x256xf32>
    %36 = arith.select %35, %34, %31 : vector<1x256xi1>, vector<1x256xf32>
    %c2_i32 = arith.constant 2 : i32
    %37 = vector.broadcast %c2_i32 : i32 to vector<1x256xi32>
    %38 = arith.select %35, %37, %33 : vector<1x256xi1>, vector<1x256xi32>
    %39 = vector.extract_strided_slice %25 {offsets = [3, 0], sizes = [1, 256], strides = [1, 1]} : vector<8x256xf32> to vector<1x256xf32>
    %40 = arith.cmpf ogt, %39, %36 : vector<1x256xf32>
    %41 = arith.select %40, %39, %36 : vector<1x256xi1>, vector<1x256xf32>
    %c3_i32 = arith.constant 3 : i32
    %42 = vector.broadcast %c3_i32 : i32 to vector<1x256xi32>
    %43 = arith.select %40, %42, %38 : vector<1x256xi1>, vector<1x256xi32>
    %44 = vector.extract_strided_slice %25 {offsets = [4, 0], sizes = [1, 256], strides = [1, 1]} : vector<8x256xf32> to vector<1x256xf32>
    %45 = arith.cmpf ogt, %44, %41 : vector<1x256xf32>
    %46 = arith.select %45, %44, %41 : vector<1x256xi1>, vector<1x256xf32>
    %c4_i32 = arith.constant 4 : i32
    %47 = vector.broadcast %c4_i32 : i32 to vector<1x256xi32>
    %48 = arith.select %45, %47, %43 : vector<1x256xi1>, vector<1x256xi32>
    %49 = vector.extract_strided_slice %25 {offsets = [5, 0], sizes = [1, 256], strides = [1, 1]} : vector<8x256xf32> to vector<1x256xf32>
    %50 = arith.cmpf ogt, %49, %46 : vector<1x256xf32>
    %51 = arith.select %50, %49, %46 : vector<1x256xi1>, vector<1x256xf32>
    %c5_i32 = arith.constant 5 : i32
    %52 = vector.broadcast %c5_i32 : i32 to vector<1x256xi32>
    %53 = arith.select %50, %52, %48 : vector<1x256xi1>, vector<1x256xi32>
    %54 = vector.extract_strided_slice %25 {offsets = [6, 0], sizes = [1, 256], strides = [1, 1]} : vector<8x256xf32> to vector<1x256xf32>
    %55 = arith.cmpf ogt, %54, %51 : vector<1x256xf32>
    %56 = arith.select %55, %54, %51 : vector<1x256xi1>, vector<1x256xf32>
    %c6_i32 = arith.constant 6 : i32
    %57 = vector.broadcast %c6_i32 : i32 to vector<1x256xi32>
    %58 = arith.select %55, %57, %53 : vector<1x256xi1>, vector<1x256xi32>
    %59 = vector.extract_strided_slice %25 {offsets = [7, 0], sizes = [1, 256], strides = [1, 1]} : vector<8x256xf32> to vector<1x256xf32>
    %60 = arith.cmpf ogt, %59, %56 : vector<1x256xf32>
    %c7_i32 = arith.constant 7 : i32
    %61 = vector.broadcast %c7_i32 : i32 to vector<1x256xi32>
    %62 = arith.select %60, %61, %58 : vector<1x256xi1>, vector<1x256xi32>
    %c0_14 = arith.constant 0 : index
    %c0_15 = arith.constant 0 : index
    %63 = vector.load %arg4[%c0_14, %c0_15] : memref<1x256xi32, #tpu.memory_space<vmem>>, vector<1x256xi32>
    tpu.vector_store %arg4[%c0_14, %c0_15], %62 {strides = array<i32>} : memref<1x256xi32, #tpu.memory_space<vmem>>, vector<1x256xi32>,
    return
  }
  func.func @transform_0(%arg0: i32) -> (i32, i32) {
    %c0_i32 = arith.constant 0 : i32
    %c0_i32_0 = arith.constant 0 : i32
    return %arg0, %c0_i32 : i32, i32
  }
  func.func @transform_1(%arg0: i32) -> (i32, i32) {
    %c0_i32 = arith.constant 0 : i32
    %c0_i32_0 = arith.constant 0 : i32
    %c0_i32_1 = arith.constant 0 : i32
    return %c0_i32, %c0_i32_0 : i32, i32
  }
  func.func @transform_2(%arg0: i32) -> (i32, i32) {
    %c0_i32 = arith.constant 0 : i32
    %c0_i32_0 = arith.constant 0 : i32
    return %c0_i32, %arg0 : i32, i32
  }
  func.func @transform_3(%arg0: i32) -> (i32, i32) {
    %c0_i32 = arith.constant 0 : i32
    %c0_i32_0 = arith.constant 0 : i32
    return %c0_i32, %arg0 : i32, i32
  }
}

</mosaic_0001>

<bundles_post_ra>
// kernel: tpu_custom_call.1
= control target key start
LH: loop header
LB: loop body
LE: loop exit
PB: predicated region body
PF: predicated region fallthrough
CT: control target
= control target key end

     0   :  { %9 = vsyncpa [#allocation3], 0  ;;  %vm121_vm0 = vcmask 130048   ;;  %v663_v7 = vmov 0   ;;  %s909_s0 = inlined_call_operand.vmem [shape: f32[256,16], index: 0, kind: input, shape index: {}]   ;;  %s910_s1 = inlined_call_operand.vmem [shape: bf16[144,128], index: 1, kind: input, shape index: {}]   ;;  %s911_s2 = inlined_call_operand.hbm [shape: f32[8,256], index: 2, kind: output, shape index: {0}]   ;;  %s912_s3 = inlined_call_operand.hbm [shape: s32[1,256], index: 3, kind: output, shape index: {1}]  }
   0x1   :  { %v32_v0 = vld [vmem:[%s909_s0 + $0x80] sm:$0xff]  ;;  %v33_v1 = vld [vmem:[%s909_s0 + $0x88] sm:$0xff]  ;;  %v34_v5 = vld [vmem:[%s909_s0 + $0x90] sm:$0xff]  ;;  %589 = vset.pattern.permute.xlu0 %v663_v7  ;;  %310 = vmatprep.mubr.bf16.mxu1 %v663_v7 }
   0x2   :  { %v16_v2 = vld [vmem:[%s909_s0] sm:$0xff]  ;;  %v56_v3 = vpack.c.bf16 %v33_v1, %v32_v0  ;;  %v17_v4 = vld [vmem:[%s909_s0 + $0x8] sm:$0xff]  ;;  %v35_v6 = vld [vmem:[%s909_s0 + $0x98] sm:$0xff]  ;;  %600 = vset.pattern.permute.xlu1 %v663_v7 }
   0x3   :  { %v48_v8 = vpack.c.bf16 %v17_v4, %v16_v2  ;;  %v57_v9 = vpack.c.bf16 %v35_v6, %v34_v5  ;;  %v18_v10 = vld [vmem:[%s909_s0 + $0x10] sm:$0xff]  ;;  %v19_v11 = vld [vmem:[%s909_s0 + $0x18] sm:$0xff]  ;;  %v36_v14 = vld [vmem:[%s909_s0 + $0xa0] sm:$0xff] }
   0x4   :  { %577 = vmatprep.subr.msk.bf16.mxu0 %vm121_vm0, %v56_v3  ;;  %v49_v13 = vpack.c.bf16 %v19_v11, %v18_v10  ;;  %v37_v15 = vld [vmem:[%s909_s0 + $0xa8] sm:$0xff]  ;;  %v20_v18 = vld [vmem:[%s909_s0 + $0x20] sm:$0xff]  ;;  %v38_v22 = vld [vmem:[%s909_s0 + $0xb0] sm:$0xff] }
   0x5   :  { %v129_v12 = vsel %vm121_vm0, %v48_v8, 0  ;;  %v58_v17 = vpack.c.bf16 %v37_v15, %v36_v14  ;;  %v21_v19 = vld [vmem:[%s909_s0 + $0x28] sm:$0xff]  ;;  %v733_v20 = vld [vmem:[%s910_s1] sm:$0xff]   ;;  %v749_v25 = vld [vmem:[%s910_s1 + $0x30] sm:$0xff]  }
   0x6   :  { %558 = vmatpush3.bf16.xpose.msra.mxu0 %v129_v12  ;;  %v132_v16 = vsel %vm121_vm0, %v49_v13, 0  ;;  %v73_v21 = vld [vmem:[%s910_s1 + $0x24] sm:$0xf]  ;;  %573 = vmatprep.mubr.msk.bf16.mxu0 %vm121_vm0, %v733_v20  ;;  %v555_v23 = vld [vmem:[%s910_s1 + $0x28] sm:$0xff]   ;;  %v50_v26 = vpack.c.bf16 %v21_v19, %v20_v18  ;;  %v80_v29 = vunpack.c.l.bf16 %v749_v25  ;;  %v39_v30 = vld [vmem:[%s909_s0 + $0xb8] sm:$0xff] }
   0x7   :  { %578 = vmatprep.subr.msk.bf16.mxu0 %vm121_vm0, %v57_v9  ;;  %v77_v24 = vunpack.c.l.bf16 %v73_v21  ;;  %v549_v27 = vunpack.c.l.bf16 %v555_v23  ;;  %v550_v28 = vunpack.c.h.bf16 %v555_v23 }
   0xe   :  { %560 = vmatpush3.bf16.xpose.msra.mxu0 %v132_v16 }
   0xf   :  { %579 = vmatprep.subr.msk.bf16.mxu0 %vm121_vm0, %v58_v17 }
  0x10   :  { %10 = vsyncpa [#allocation5], 0  ;;  %v590_v31 = vpack.i.bf16 %v549_v27, %v77_v24  ;;  %v135_v32 = vsel %vm121_vm0, %v50_v26, 0  ;;  %v59_v33 = vpack.c.bf16 %v39_v30, %v38_v22  ;;  %v595_v34 = vpack.i.bf16 %v80_v29, %v550_v28  ;;  %v22_v35 = vld [vmem:[%s909_s0 + $0x30] sm:$0xff]  ;;  %v23_v36 = vld [vmem:[%s909_s0 + $0x38] sm:$0xff]  ;;  %s664_s14 = smov [#allocation2]  }
  0x11   :  { %v89_v37 = vld [vmem:[%s910_s1 + $0x40] sm:$0xff]   ;;  %v51_v38 = vpack.c.bf16 %v23_v36, %v22_v35  ;;  %v41_v41 = vld [vmem:[%s909_s0 + $0xc8] sm:$0xff]  ;;  %v42_v47 = vld [vmem:[%s909_s0 + $0xd0] sm:$0xff]  ;;  %v85_v8 = vunpack.c.h.bf16 %v749_v25  ;;  %vm271_vm1 = vcmask 261120   ;;  %s516_s15 = sshll.u32 %s664_s14, 4  ;;  %s517_s15 = int_to_ptr.vmem [resolvable:$true] %s516_s15 }
  0x12   :  { %591 = vperm.xlu0 %589, %v590_v31   ;;  %v90_v39 = vunpack.c.h.bf16 %v89_v37  ;;  %v40_v40 = vld [vmem:[%s909_s0 + $0xc0] sm:$0xff]  ;;  %v25_v45 = vld [vmem:[%s909_s0 + $0x48] sm:$0xff]  ;;  %v43_v48 = vld [vmem:[%s909_s0 + $0xd8] sm:$0xff]  ;;  %v88_v11 = vunpack.c.l.bf16 %v89_v37  ;;  %p620_p1 = scmp.lt.s32.totalorder %s517_s15, %s517_s15 }
  0x13   :  { %v138_v42 = vsel %vm121_vm0, %v51_v38, 0  ;;  %v60_v43 = vpack.c.bf16 %v41_v41, %v40_v40  ;;  %v24_v44 = vld [vmem:[%s909_s0 + $0x40] sm:$0xff]  ;;  %v61_v50 = vpack.c.bf16 %v43_v48, %v42_v47  ;;  %v26_v51 = vld [vmem:[%s909_s0 + $0x50] sm:$0xff]  ;;  %v27_v52 = vld [vmem:[%s909_s0 + $0x58] sm:$0xff] }
  0x14   :  { %v52_v46 = vpack.c.bf16 %v25_v45, %v24_v44  ;;  %v53_v53 = vpack.c.bf16 %v27_v52, %v26_v51  ;;  %v44_v54 = vld [vmem:[%s909_s0 + $0xe0] sm:$0xff]  ;;  %v45_v55 = vld [vmem:[%s909_s0 + $0xe8] sm:$0xff]  ;;  %v46_v61 = vld [vmem:[%s909_s0 + $0xf0] sm:$0xff] }
  0x15   :  { %v62_v57 = vpack.c.bf16 %v45_v55, %v44_v54  ;;  %v28_v58 = vld [vmem:[%s909_s0 + $0x60] sm:$0xff]  ;;  %v29_v59 = vld [vmem:[%s909_s0 + $0x68] sm:$0xff]  ;;  %v47_v62 = vld [vmem:[%s909_s0 + $0xf8] sm:$0xff] }
  0x16   :  { %562 = vmatpush3.bf16.xpose.msra.mxu0 %v135_v32  ;;  %596 = vperm.xlu0 %589, %v595_v34   ;;  %v141_v49 = vsel %vm121_vm0, %v52_v46, 0  ;;  %v144_v56 = vsel %vm121_vm0, %v53_v53, 0  ;;  %v54_v60 = vpack.c.bf16 %v29_v59, %v28_v58  ;;  %v63_v0 = vpack.c.bf16 %v47_v62, %v46_v61  ;;  %v30_v1 = vld [vmem:[%s909_s0 + $0x70] sm:$0xff]  ;;  %v31_v2 = vld [vmem:[%s909_s0 + $0x78] sm:$0xff]  ;;  %v612_v5 = vld [vmem:[%s910_s1 + $0x8] sm:$0xff]  }
  0x17   :  { %580 = vmatprep.subr.msk.bf16.mxu0 %vm121_vm0, %v59_v33  ;;  %v55_v3 = vpack.c.bf16 %v31_v2, %v30_v1  ;;  %v556_v6 = vld [vmem:[%s910_s1 + $0x38] sm:$0xff]   ;;  %v613_v48 = vld [vmem:[%s910_s1 + $0x10] sm:$0xff]  }
  0x18   :  { %v147_v63 = vsel %vm121_vm0, %v54_v60, 0  ;;  %v553_v9 = vunpack.c.l.bf16 %v556_v6  ;;  %v554_v10 = vunpack.c.h.bf16 %v556_v6 }
  0x19   :  { %v150_v4 = vsel %vm121_vm0, %v55_v3, 0 }
  0x1a   :  { %345 = vperm.xlu0 %589, %v90_v39   ;;  %v601_v12 = vpack.i.bf16 %v553_v9, %v85_v8  ;;  %v606_v13 = vpack.i.bf16 %v88_v11, %v554_v10 }
  0x1c   :  { %602 = vperm.xlu1 %600, %v601_v12  }
  0x1e   :  { %564 = vmatpush3.bf16.xpose.msra.mxu0 %v138_v42 }
  0x1f   :  { %581 = vmatprep.subr.msk.bf16.mxu0 %vm121_vm0, %v60_v43 }
  0x20   :  { %607 = vperm.xlu1 %600, %v606_v13  }
  0x26   :  { %566 = vmatpush3.bf16.xpose.msra.mxu0 %v141_v49  ;;  %v614_v49 = vld [vmem:[%s910_s1 + $0x18] sm:$0xff]  }
  0x27   :  { %582 = vmatprep.subr.msk.bf16.mxu0 %vm121_vm0, %v61_v50 }
  0x2e   :  { %568 = vmatpush3.bf16.xpose.msra.mxu0 %v144_v56 }
  0x2f   :  { %583 = vmatprep.subr.msk.bf16.mxu0 %vm121_vm0, %v62_v57 }
  0x36   :  { %570 = vmatpush3.bf16.xpose.msra.mxu0 %v147_v63 }
  0x37   :  { %584 = vmatprep.subr.msk.bf16.mxu0 %vm121_vm0, %v63_v0 }
  0x3e   :  { %572 = vmatpush3.bf16.xpose.msra.mxu0 %v150_v4 }
  0x45   :  { %574 = vmatmul.mubr.msk.bf16.vlgmr.msra.gmra.mrb[0].mxu0 %vm121_vm0, %v733_v20 }
  0x46   :  { %575 = vmatprep.mubr.msk.bf16.mxu0 %vm121_vm0, %v612_v5 }
  0x4d   :  { %576 = vmatmul.mubr.msk.bf16.gmra.mrb[4].mxu0 %vm121_vm0, %v612_v5 }
  0x91   :  { %v592_v14 = vpop.permute.xlu0 %591 }
  0x92   :  { %v593_v15 = vunpack.i.l.bf16 %v592_v14  ;;  %v594_v16 = vunpack.i.h.bf16 %v592_v14 }
  0x95   :  { %v597_v24 = vpop.permute.xlu0 %596 }
  0x96   :  { %v598_v27 = vunpack.i.l.bf16 %v597_v24  ;;  %v599_v34 = vunpack.i.h.bf16 %v597_v24 }
  0x9b   :  { %v603_v50 = vpop.permute.xlu1 %602 }
  0x9c   :  { %v604_v51 = vunpack.i.l.bf16 %v603_v50  ;;  %v605_v52 = vunpack.i.h.bf16 %v603_v50 }
  0x9f   :  { %v608_v56 = vpop.permute.xlu1 %607 }
  0xa0   :  { %v609_v63 = vunpack.i.l.bf16 %v608_v56  ;;  %v610_v6 = vunpack.i.h.bf16 %v608_v56 }
 0x118   :  { %v210_v17 = vpop.f32.mrb[0].mxu0 }
 0x119   :  { %v211_v18 = vadd.f32 %v593_v15, %v210_v17  ;;  %v212_v19 = vpop.f32.mrb[1].mxu0 }
 0x11a   :  { %v213_v20 = vadd.f32 %v593_v15, %v212_v19  ;;  %v214_v21 = vpop.f32.mrb[2].mxu0 }
 0x11b   :  { %v215_v22 = vadd.f32 %v594_v16, %v214_v21  ;;  %v216_v23 = vpop.f32.mrb[3].mxu0  ;;  %v229_v25 = vmax.f32 %v211_v18, 0.0  ;;  %v72_v21 = vld [vmem:[%s910_s1 + $0x20] sm:$0xf]  ;;  %s615_s1 = scalar_lea.vmem %s517_s15, 256 }
 0x11c   :  { %v217_v26 = vadd.f32 %v594_v16, %v216_v23  ;;  %v230_v29 = vmax.f32 %v213_v20, 0.0  ;;  %p616_p0 = scmp.ne.s32.totalorder %s517_s15, %s615_s1  ;;  %p621_p2 = scmp.lt.s32.totalorder %s615_s1, %s615_s1 }
 0x11d   :  { %v231_v28 = vmax.f32 %v215_v22, 0.0  ;;  %v346_v22 = vpop.permute.xlu0 %345 }
 0x11e   :  { %v232_v30 = vmax.f32 %v217_v26, 0.0  ;;  %p622_p3 = por %p621_p2, %p620_p1 }
 0x11f   :  { %v237_v31 = vpack.c.bf16 %v231_v28, %v229_v25 }
 0x120   :  { %v220_v32 = vpop.f32.mrb[4].mxu0  ;;  %v238_v33 = vpack.c.bf16 %v232_v30, %v230_v29  ;;  %p623_p4 = pnand %p622_p3, %p616_p0 }
 0x121   :  { %v221_v35 = vadd.f32 %v598_v27, %v220_v32  ;;  %v222_v36 = vpop.f32.mrb[5].mxu0 }
 0x122   :  { %v223_v37 = vadd.f32 %v598_v27, %v222_v36  ;;  %v224_v38 = vpop.f32.mrb[6].mxu0  ;;  %278 = vmatprep.subr.bf16.mxu1 %v238_v33 }
 0x123   :  { %v225_v39 = vadd.f32 %v599_v34, %v224_v38  ;;  %v226_v40 = vpop.f32.mrb[7].mxu0  ;;  %279 = vmatpush1.bf16.msra.mxu1 %v237_v31  ;;  %v233_v42 = vmax.f32 %v221_v35, 0.0 }
 0x124   :  { %v227_v41 = vadd.f32 %v599_v34, %v226_v40  ;;  %v234_v44 = vmax.f32 %v223_v37, 0.0 }
 0x125   :  { %v235_v43 = vmax.f32 %v225_v39, 0.0 }
 0x126   :  { %v236_v45 = vmax.f32 %v227_v41, 0.0 }
 0x127   :  { %v239_v46 = vpack.c.bf16 %v235_v43, %v233_v42 }
 0x128   :  { %v240_v47 = vpack.c.bf16 %v236_v45, %v234_v44 }
 0x12a   :  { %280 = vmatprep.subr.bf16.mxu1 %v240_v47 }
 0x12b   :  { %281 = vmatpush1.bf16.msra.mxu1 %v239_v46 }
 0x12e   :  { %544 = vmatmul.mubr.msk.bf16.vlgmr.msra.gmra.mrb[0].mxu1 %vm271_vm1, %v613_v48 }
 0x12f   :  { %320 = vmatprep.mubr.bf16.mxu1 %v663_v7 }
 0x136   :  { %545 = vmatmul.mubr.msk.bf16.gmra.mrb[4].mxu1 %vm271_vm1, %v614_v49 }
 0x137   :  { %383 = vmatprep.mubr.bf16.mxu1 %v663_v7 }
 0x201   :  { %v312_v53 = vpop.f32.mrb[0].mxu1 }
 0x202   :  { %v313_v54 = vadd.f32 %v604_v51, %v312_v53  ;;  %v314_v55 = vpop.f32.mrb[1].mxu1 }
 0x203   :  { %v315_v57 = vadd.f32 %v604_v51, %v314_v55  ;;  %v316_v58 = vpop.f32.mrb[2].mxu1 }
 0x204   :  { %v317_v59 = vadd.f32 %v605_v52, %v316_v58  ;;  %v318_v60 = vpop.f32.mrb[3].mxu1  ;;  %v331_v62 = vmax.f32 %v313_v54, 0.0 }
 0x205   :  { %v319_v61 = vadd.f32 %v605_v52, %v318_v60  ;;  %v332_v1 = vmax.f32 %v315_v57, 0.0 }
 0x206   :  { %v333_v0 = vmax.f32 %v317_v59, 0.0 }
 0x207   :  { %v334_v2 = vmax.f32 %v319_v61, 0.0 }
 0x208   :  { %v339_v3 = vpack.c.bf16 %v333_v0, %v331_v62 }
 0x209   :  { %v340_v4 = vpack.c.bf16 %v334_v2, %v332_v1  ;;  %v322_v5 = vpop.f32.mrb[4].mxu1 }
 0x20a   :  { %v323_v8 = vadd.f32 %v609_v63, %v322_v5  ;;  %v324_v9 = vpop.f32.mrb[5].mxu1 }
 0x20b   :  { %v325_v10 = vadd.f32 %v609_v63, %v324_v9  ;;  %v326_v11 = vpop.f32.mrb[6].mxu1  ;;  %351 = vmatprep.subr.bf16.mxu1 %v340_v4 }
 0x20c   :  { %v327_v12 = vadd.f32 %v610_v6, %v326_v11  ;;  %v328_v13 = vpop.f32.mrb[7].mxu1  ;;  %352 = vmatpush1.bf16.msra.mxu1 %v339_v3  ;;  %v335_v15 = vmax.f32 %v323_v8, 0.0 }
 0x20d   :  { %v329_v14 = vadd.f32 %v610_v6, %v328_v13  ;;  %v336_v17 = vmax.f32 %v325_v10, 0.0 }
 0x20e   :  { %v337_v16 = vmax.f32 %v327_v12, 0.0 }
 0x20f   :  { %v338_v18 = vmax.f32 %v329_v14, 0.0 }
 0x210   :  { %v341_v19 = vpack.c.bf16 %v337_v16, %v335_v15 }
 0x211   :  { %v342_v20 = vpack.c.bf16 %v338_v18, %v336_v17 }
 0x213   :  { %353 = vmatprep.subr.bf16.mxu1 %v342_v20 }
 0x214   :  { %354 = vmatpush1.bf16.msra.mxu1 %v341_v19 }
 0x217   :  { %546 = vmatmul.mubr.msk.bf16.vlgmr.msra.gmra.mrb[8].mxu1 %vm271_vm1, %v72_v21 }
 0x2ea   :  { %v385_v23 = vpop.f32.mrb[8].mxu1 }
 0x2eb   :  { %v849_v24 = vadd.f32 %v385_v23, %v346_v22  ;;  %v387_v26 = vpop.f32.mrb[9].mxu1 }
 0x2ec   :  { %v851_v25 = vadd.f32 %v387_v26, %v346_v22  ;;  %v389_v27 = vpop.f32.mrb[10].mxu1 }
 0x2ed   :  { %392 = vst [vmem:[#allocation2] sm:$0xff] %v849_v24  ;;  %v390_v28 = vpop.f32.mrb[11].mxu1  ;;  %v396_v29 = vrot.slane %v849_v24, 7 }
 0x2ee   :  { %393 = vst [vmem:[#allocation2 + $0x8] sm:$0xff] %v851_v25  ;;  %v397_v30 = vrot.slane %v851_v25, 7 }
 0x2ef   :  { %626 = shalt.err (!%p623_p4)
}
 0x2f0   :  { %s627_s18 = scalar_lea.hbm %s911_s2, 256 }
 0x2f1   :  { %p628_p5 = scmp.ne.s32.totalorder %s911_s2, %s627_s18  ;;  %p631_p6 = scmp.lt.u32.totalorder %s627_s18, %s911_s2 }
 0x2f3   :  { %p633_p7 = pnand %p631_p6, %p628_p5 }
 0x2f5   :  { %636 = shalt.err (!%p633_p7)
}
 0x2f6   :  { %519 = dma.vmem_to_hbm [thread:$0]  %s517_s15, 256, %s911_s2, [#allocation3]   ;;  %vm400_vm2 = vcmp.gt.f32.partialorder %v849_v24, %v396_v29  ;;  %vm401_vm3 = vcmp.gt.f32.partialorder %v851_v25, %v397_v30  ;;  %v665_v62 = vmov 1966171168   ;;  %v492_v2 = vlaneseq }
 0x2f7   :  { %v402_v31 = vsel %vm400_vm2, %v849_v24, %v396_v29  ;;  %v404_v32 = vsel %vm400_vm2, 1, %v663_v7  ;;  %v403_v33 = vsel %vm401_vm3, %v851_v25, %v397_v30  ;;  %v405_v34 = vsel %vm401_vm3, 1, %v663_v7  ;;  %s666_s2 = smov [#allocation4]  }
 0x2f8   :  { %v408_v35 = vrot.slane %v402_v31, 7  ;;  %v416_v36 = vrot.slane %v404_v32, 7  ;;  %v409_v37 = vrot.slane %v403_v33, 7  ;;  %v417_v38 = vrot.slane %v405_v34, 7  ;;  %s526_s25 = sshll.u32 %s666_s2, 4  ;;  %s527_s25 = int_to_ptr.vmem [resolvable:$true] %s526_s25 }
 0x2f9   :  { %v490_v63 = vunpack.c.l.s4 %v665_v62  ;;  %v493_v13 = vshrl.u32 %v492_v2, 7  ;;  %vm507_vm0 = vcmp.lt.s32.totalorder %v492_v2, 256  ;;  %s637_s26 = scalar_lea.vmem %s527_s25, 32  ;;  %p642_p9 = scmp.lt.s32.totalorder %s527_s25, %s527_s25 }
 0x2fa   :  { %vm412_vm4 = vcmp.gt.f32.partialorder %v849_v24, %v408_v35  ;;  %vm413_vm5 = vcmp.gt.f32.partialorder %v851_v25, %v409_v37  ;;  %p638_p8 = scmp.ne.s32.totalorder %s527_s25, %s637_s26  ;;  %p643_p10 = scmp.lt.s32.totalorder %s637_s26, %s637_s26 }
 0x2fb   :  { %v414_v39 = vsel %vm412_vm4, %v849_v24, %v408_v35  ;;  %v418_v40 = vsel %vm412_vm4, 2, %v416_v36  ;;  %v415_v41 = vsel %vm413_vm5, %v851_v25, %v409_v37  ;;  %v419_v42 = vsel %vm413_vm5, 2, %v417_v38 }
 0x2fc   :  { %v422_v43 = vrot.slane %v414_v39, 7  ;;  %v430_v44 = vrot.slane %v418_v40, 7  ;;  %v423_v45 = vrot.slane %v415_v41, 7  ;;  %v431_v46 = vrot.slane %v419_v42, 7  ;;  %p644_p11 = por %p643_p10, %p642_p9 }
 0x2fd   :  { %v491_v10 = vunpack.c.0.s8 %v490_v63 }
 0x2fe   :  { %vm426_vm6 = vcmp.gt.f32.partialorder %v849_v24, %v422_v43  ;;  %vm427_vm7 = vcmp.gt.f32.partialorder %v851_v25, %v423_v45  ;;  %p645_p12 = pnand %p644_p11, %p638_p8 }
 0x2ff   :  { %v428_v7 = vsel %vm426_vm6, %v849_v24, %v422_v43  ;;  %v432_v47 = vsel %vm426_vm6, 3, %v430_v44  ;;  %v429_v48 = vsel %vm427_vm7, %v851_v25, %v423_v45  ;;  %v433_v49 = vsel %vm427_vm7, 3, %v431_v46 }
 0x300   :  { %v436_v50 = vrot.slane %v428_v7, 7  ;;  %v444_v51 = vrot.slane %v432_v47, 7  ;;  %v437_v52 = vrot.slane %v429_v48, 7  ;;  %v445_v53 = vrot.slane %v433_v49, 7 }
 0x301   :  { %v494_v21 = vsub.s32 %v491_v10, %v493_v13 }
 0x302   :  { %vm440_vm8 = vcmp.gt.f32.partialorder %v849_v24, %v436_v50  ;;  %vm441_vm9 = vcmp.gt.f32.partialorder %v851_v25, %v437_v52 }
 0x303   :  { %v442_v54 = vsel %vm440_vm8, %v849_v24, %v436_v50  ;;  %v446_v55 = vsel %vm440_vm8, 4, %v444_v51  ;;  %v443_v56 = vsel %vm441_vm9, %v851_v25, %v437_v52  ;;  %v447_v57 = vsel %vm441_vm9, 4, %v445_v53 }
 0x304   :  { %v450_v58 = vrot.slane %v442_v54, 7  ;;  %v458_v59 = vrot.slane %v446_v55, 7  ;;  %v451_v60 = vrot.slane %v443_v56, 7  ;;  %v459_v61 = vrot.slane %v447_v57, 7 }
 0x306   :  { %vm454_vm10 = vcmp.gt.f32.partialorder %v849_v24, %v450_v58  ;;  %vm455_vm11 = vcmp.gt.f32.partialorder %v851_v25, %v451_v60 }
 0x307   :  { %v456_v0 = vsel %vm454_vm10, %v849_v24, %v450_v58  ;;  %v460_v1 = vsel %vm454_vm10, 5, %v458_v59  ;;  %v457_v3 = vsel %vm455_vm11, %v851_v25, %v451_v60  ;;  %v461_v4 = vsel %vm455_vm11, 5, %v459_v61 }
 0x308   :  { %v464_v5 = vrot.slane %v456_v0, 7  ;;  %v472_v6 = vrot.slane %v460_v1, 7  ;;  %v465_v8 = vrot.slane %v457_v3, 7  ;;  %v473_v9 = vrot.slane %v461_v4, 7 }
 0x30a   :  { %vm468_vm12 = vcmp.gt.f32.partialorder %v849_v24, %v464_v5  ;;  %vm469_vm13 = vcmp.gt.f32.partialorder %v851_v25, %v465_v8 }
 0x30b   :  { %v470_v11 = vsel %vm468_vm12, %v849_v24, %v464_v5  ;;  %v474_v12 = vsel %vm468_vm12, 6, %v472_v6  ;;  %v471_v14 = vsel %vm469_vm13, %v851_v25, %v465_v8  ;;  %v475_v15 = vsel %vm469_vm13, 6, %v473_v9 }
 0x30c   :  { %v478_v16 = vrot.slane %v470_v11, 7  ;;  %v484_v17 = vrot.slane %v474_v12, 7  ;;  %v479_v18 = vrot.slane %v471_v14, 7  ;;  %v485_v19 = vrot.slane %v475_v15, 7 }
 0x30e   :  { %vm482_vm14 = vcmp.gt.f32.partialorder %v849_v24, %v478_v16  ;;  %vm483_vm15 = vcmp.gt.f32.partialorder %v851_v25, %v479_v18 }
 0x30f   :  { %v486_v20 = vsel %vm482_vm14, 7, %v484_v17  ;;  %v487_v22 = vsel %vm483_vm15, 7, %v485_v19 }
 0x310   :  { %v488_v23 = vcombine.high %v486_v20, %v487_v22 }
 0x312   :  { %v495_v26 = vrot.slane %v488_v23, %v494_v21 }
 0x314   :  { %v496_v27 = vcombine.high %v495_v26, %v495_v26 }
 0x316   :  { %v503_v28 = vrot.slane %v496_v27, %v494_v21 }
 0x318   :  { %v504_v29 = vcombine.high %v503_v28, %v503_v28 }
 0x31a   :  { %509 = vst.msk [vmem:[#allocation4] sm:$0x3] %vm507_vm0, %v504_v29 }
 0x31b   :  { %648 = shalt.err (!%p645_p12)
}
 0x31c   :  { %s649_s29 = scalar_lea.hbm %s912_s3, 32 }
 0x31d   :  { %p650_p13 = scmp.ne.s32.totalorder %s912_s3, %s649_s29  ;;  %p653_p0 = scmp.lt.u32.totalorder %s649_s29, %s912_s3 }
 0x31f   :  { %p655_p1 = pnand %p653_p0, %p650_p13 }
 0x321   :  { %658 = shalt.err (!%p655_p1)
}
 0x322   :  { %529 = dma.vmem_to_hbm [thread:$0]  %s527_s25, 32, %s912_s3, [#allocation5]  }
 0x323   :  { %659 = dma.done.wait [#allocation3], 256  }
 0x324   :  { %660 = vsyncadd [#allocation3], 4294967040 }
 0x325   :  { %661 = dma.done.wait [#allocation5], 32  }
 0x326   :  { %662 = vsyncadd [#allocation5], 4294967264 }
 0x327   :  { %536 = vsyncpa [#allocation3], 1 }
 0x328   :  { %537 = vsyncpa [#allocation5], 1 }

</bundles_post_ra>
